<compile_context>
chip_gen: v7x
topology: tpu7x:2x2x1
jax: 0.10.0
libtpu: 0.0.40
codegen_flags: <defaults>
</compile_context>

<pallas_src>
import functools

import jax
import jax.numpy as jnp
from jax.experimental import pallas as pl
from jax.experimental.pallas import tpu as pltpu

LANES = 128
MAX_BLOCK_ROWS = 1024  # (1024,128) f32 tile = 512 KiB; well within scoped VMEM on v5e/v6e/v7x


def _round_up(x, m):
    return ((x + m - 1) // m) * m


def _focal_loss_kernel(x_ref, t_ref, out_ref, *,
                       gamma, alpha, n_valid, block_rows, has_pad):
    i = pl.program_id(0)

    x = x_ref[...].astype(jnp.float32)
    is_pos = t_ref[...].astype(jnp.float32) > 0.5  # bf16 0/1 indicator

    # log-sigmoid formulation:
    #   pt    = sigmoid(z), z = x for positives else -x
    #   logpt = log(sigmoid(z)) = min(z, 0) - log(1 + exp(-|z|))   (stable)
    z = jnp.where(is_pos, x, -x)
    logpt = jnp.minimum(z, 0.0) - jnp.log(1.0 + jnp.exp(-jnp.abs(z)))
    pt = jnp.exp(logpt)

    if alpha is not None:
        at = jnp.where(is_pos, jnp.float32(alpha), jnp.float32(1.0 - alpha))
        logpt = logpt * at

    one_m_pt = 1.0 - pt
    if gamma == 0.0:
        loss = -logpt
    elif gamma == 1.0:
        loss = -one_m_pt * logpt
    elif gamma == 2.0:
        loss = -(one_m_pt * one_m_pt) * logpt
    else:
        loss = -(one_m_pt ** gamma) * logpt

    if has_pad:
        # Mask out padded tail elements (only present in the last block).
        row = jax.lax.broadcasted_iota(jnp.int32, loss.shape, 0)
        lane = jax.lax.broadcasted_iota(jnp.int32, loss.shape, 1)
        gidx = (i * block_rows + row) * LANES + lane
        loss = jnp.where(gidx < n_valid, loss, 0.0)

    # Per-block partial reduction on the VPU only: (block_rows,128) -> (8,128).
    out_ref[0] = loss.reshape(block_rows // 8, 8, LANES).sum(axis=0)


def binary_focal_loss(logits, targets, *, gamma=0.0, alpha=None,
                      size_average=True):
    """Pallas equivalent of BinaryClassFocalLoss(gamma, alpha, size_average)."""
    x = jnp.reshape(logits, (-1,))
    # Match torch: target.view(-1).long() == 1, shipped as a bf16 0/1 indicator.
    t_ind = (jnp.reshape(targets, (-1,)).astype(jnp.int32) == 1).astype(jnp.bfloat16)
    n = x.shape[0]

    rows_needed = -(-n // LANES)
    # Multiple of 16 keeps both the f32 (8,128) and bf16 (16,128) tilings happy.
    block_rows = min(MAX_BLOCK_ROWS, _round_up(rows_needed, 16))
    rows = _round_up(rows_needed, block_rows)
    n_pad = rows * LANES
    pad = n_pad - n
    if pad:
        x = jnp.pad(x, (0, pad))
        t_ind = jnp.pad(t_ind, (0, pad))

    x2 = x.reshape(rows, LANES)
    t2 = t_ind.reshape(rows, LANES)
    grid = (rows // block_rows,)

    kernel = functools.partial(
        _focal_loss_kernel,
        gamma=float(gamma),
        alpha=None if alpha is None else float(alpha),
        n_valid=n,
        block_rows=block_rows,
        has_pad=pad > 0)

    partials = pl.pallas_call(
        kernel,
        out_shape=jax.ShapeDtypeStruct((grid[0], 8, LANES), jnp.float32),
        grid_spec=pltpu.PrefetchScalarGridSpec(
            num_scalar_prefetch=0,
            grid=grid,
            in_specs=[pl.BlockSpec((block_rows, LANES), lambda i: (i, 0)),
                      pl.BlockSpec((block_rows, LANES), lambda i: (i, 0))],
            out_specs=pl.BlockSpec((1, 8, LANES), lambda i: (i, 0, 0)),
        ),
        compiler_params=pltpu.CompilerParams(
            dimension_semantics=("parallel",)),
    )(x2, t2)

    total = jnp.sum(partials)
    if size_average:
        total = total / jnp.float32(n)
    return total


def _reference(logits, targets, gamma, alpha, size_average):
    pred = jax.nn.sigmoid(logits.reshape(-1).astype(jnp.float32))
    t = targets.reshape(-1).astype(jnp.int32)
    pt = jnp.where(t == 1, pred, 1.0 - pred)
    logpt = jnp.log(pt)
    if alpha is not None:
        at = jnp.where(t == 1, alpha, 1.0 - alpha)
        logpt = logpt * at
    loss = -((1.0 - pt) ** gamma) * logpt
    return loss.mean() if size_average else loss.sum()


if __name__ == "__main__":
    key = jax.random.PRNGKey(0)
    k1, k2 = jax.random.split(key)

    # NCHW-style logits and binary targets (same shape), as the module implies.
    x = jax.random.normal(k1, (2, 4, 16, 16), dtype=jnp.float32)
    y = (jax.random.uniform(k2, (2, 4, 16, 16)) > 0.5).astype(jnp.float32)

    gamma, alpha, size_average = 2.0, 0.25, True

    loss = binary_focal_loss(x, y, gamma=gamma, alpha=alpha,
                             size_average=size_average)
    loss = jax.block_until_ready(loss)

    ref = _reference(x, y, gamma, alpha, size_average)
    assert jnp.allclose(loss, ref, atol=1e-5, rtol=1e-5), (loss, ref)

    print("KERNEL_OK")
</pallas_src>

<mosaic_0001>
module attributes {stable_mosaic.version = 11 : i64} {
  func.func @_focal_loss_kernel(%arg0: i32, %arg1: memref<16x128xf32, #tpu.memory_space<vmem>>, %arg2: memref<16x128xbf16, #tpu.memory_space<vmem>>, %arg3: memref<1x8x128xf32, #tpu.memory_space<vmem>>) attributes {dimension_semantics = [#tpu.dimension_semantics<parallel>], iteration_bounds = array<i64: 1>, scalar_prefetch = 0 : i64, scratch_operands = 0 : i64, tpu.core_type = #tpu.core_type<tc>, window_params = [{transform_indices = @transform_0, window_bounds = array<i64: 16, 128>}, {transform_indices = @transform_1, window_bounds = array<i64: 16, 128>}, {transform_indices = @transform_2, window_bounds = array<i64: 1, 8, 128>}]} {
    %c0 = arith.constant 0 : index
    %c0_0 = arith.constant 0 : index
    %0 = vector.load %arg1[%c0, %c0_0] : memref<16x128xf32, #tpu.memory_space<vmem>>, vector<16x128xf32>
    %c0_1 = arith.constant 0 : index
    %c0_2 = arith.constant 0 : index
    %1 = vector.load %arg2[%c0_1, %c0_2] : memref<16x128xbf16, #tpu.memory_space<vmem>>, vector<16x128xbf16>
    %2 = arith.extf %1 : vector<16x128xbf16> to vector<16x128xf32>
    %cst = arith.constant 5.000000e-01 : f32
    %3 = vector.broadcast %cst : f32 to vector<16x128xf32>
    %4 = arith.cmpf ogt, %2, %3 : vector<16x128xf32>
    %cst_3 = arith.constant 0.000000e+00 : f32
    %5 = vector.broadcast %cst_3 : f32 to vector<16x128xf32>
    %6 = arith.subf %5, %0 : vector<16x128xf32>
    %7 = arith.select %4, %0, %6 : vector<16x128xi1>, vector<16x128xf32>
    %cst_4 = arith.constant 0.000000e+00 : f32
    %8 = vector.broadcast %cst_4 : f32 to vector<16x128xf32>
    %9 = arith.minimumf %7, %8 : vector<16x128xf32>
    %10 = math.absf %7 : vector<16x128xf32>
    %cst_5 = arith.constant 0.000000e+00 : f32
    %11 = vector.broadcast %cst_5 : f32 to vector<16x128xf32>
    %12 = arith.subf %11, %10 : vector<16x128xf32>
    %13 = math.exp %12 : vector<16x128xf32>
    %cst_6 = arith.constant 1.000000e+00 : f32
    %14 = vector.broadcast %cst_6 : f32 to vector<16x128xf32>
    %15 = arith.addf %14, %13 : vector<16x128xf32>
    %16 = math.log %15 : vector<16x128xf32>
    %17 = arith.subf %9, %16 : vector<16x128xf32>
    %18 = math.exp %17 : vector<16x128xf32>
    %cst_7 = arith.constant 2.500000e-01 : f32
    %cst_8 = arith.constant 7.500000e-01 : f32
    %19 = vector.broadcast %cst_7 : f32 to vector<16x128xf32>
    %20 = vector.broadcast %cst_8 : f32 to vector<16x128xf32>
    %21 = arith.select %4, %19, %20 : vector<16x128xi1>, vector<16x128xf32>
    %22 = arith.mulf %17, %21 : vector<16x128xf32>
    %cst_9 = arith.constant 1.000000e+00 : f32
    %23 = vector.broadcast %cst_9 : f32 to vector<16x128xf32>
    %24 = arith.subf %23, %18 : vector<16x128xf32>
    %25 = arith.mulf %24, %24 : vector<16x128xf32>
    %cst_10 = arith.constant 0.000000e+00 : f32
    %26 = vector.broadcast %cst_10 : f32 to vector<16x128xf32>
    %27 = arith.subf %26, %25 : vector<16x128xf32>
    %28 = arith.mulf %27, %22 : vector<16x128xf32>
    %29 = vector.shape_cast %28 : vector<16x128xf32> to vector<2x8x128xf32>
    %cst_11 = arith.constant dense<0.000000e+00> : vector<8x128xf32>
    %30 = vector.multi_reduction <add>, %29, %cst_11 [0] : vector<2x8x128xf32> to vector<8x128xf32>
    %c0_12 = arith.constant 0 : index
    %c0_13 = arith.constant 0 : index
    %c0_14 = arith.constant 0 : index
    %31 = vector.load %arg3[%c0_12, %c0_13, %c0_14] : memref<1x8x128xf32, #tpu.memory_space<vmem>>, vector<1x8x128xf32>
    %32 = vector.shape_cast %31 : vector<1x8x128xf32> to vector<8x128xf32>
    %33 = vector.shape_cast %30 : vector<8x128xf32> to vector<1x8x128xf32>
    tpu.vector_store %arg3[%c0_12, %c0_13, %c0_14], %33 {strides = array<i32>} : memref<1x8x128xf32, #tpu.memory_space<vmem>>, vector<1x8x128xf32>,
    return
  }
  func.func @transform_0(%arg0: i32) -> (i32, i32) {
    %c0_i32 = arith.constant 0 : i32
    %c0_i32_0 = arith.constant 0 : i32
    return %arg0, %c0_i32 : i32, i32
  }
  func.func @transform_1(%arg0: i32) -> (i32, i32) {
    %c0_i32 = arith.constant 0 : i32
    %c0_i32_0 = arith.constant 0 : i32
    return %arg0, %c0_i32 : i32, i32
  }
  func.func @transform_2(%arg0: i32) -> (i32, i32, i32) {
    %c0_i32 = arith.constant 0 : i32
    %c0_i32_0 = arith.constant 0 : i32
    %c0_i32_1 = arith.constant 0 : i32
    return %arg0, %c0_i32, %c0_i32_0 : i32, i32, i32
  }
}

</mosaic_0001>

<bundles_post_ra>
// kernel: tpu_custom_call.1
= control target key start
LH: loop header
LB: loop body
LE: loop exit
PB: predicated region body
PF: predicated region fallthrough
CT: control target
= control target key end

     0   :  { %7 = vsyncpa [#allocation3], 0  ;;  %s275_s0 = inlined_call_operand.hbm [shape: f32[16,128], index: 0, kind: input, shape index: {}]   ;;  %s276_s1 = inlined_call_operand.hbm [shape: bf16[16,128], index: 1, kind: input, shape index: {}]   ;;  %s277_s2 = inlined_call_operand.hbm [shape: f32[1,8,128], index: 2, kind: output, shape index: {}]  }
   0x1   :  { %8 = vsyncpa [#allocation6], 0 }
   0x2   :  { %9 = vsyncpa [#allocation4], 0  ;;  %s200_s9 = smov [#allocation2]   ;;  %s128_s13 = scalar_lea.hbm %s275_s0, 256 }
   0x3   :  { %s15_s10 = sshll.u32 %s200_s9, 4  ;;  %p129_p0 = scmp.ne.s32.totalorder %s275_s0, %s128_s13  ;;  %s16_s10 = int_to_ptr.vmem [resolvable:$true] %s15_s10 }
   0x4   :  { %p132_p1 = scmp.lt.u32.totalorder %s128_s13, %s275_s0 }
   0x6   :  { %p134_p2 = pnand %p132_p1, %p129_p0 }
   0x8   :  { %137 = shalt.err (!%p134_p2)
}
   0x9   :  { %s138_s18 = scalar_lea.vmem %s16_s10, 256  ;;  %p143_p4 = scmp.lt.s32.totalorder %s16_s10, %s16_s10 }
   0xa   :  { %p139_p3 = scmp.ne.s32.totalorder %s16_s10, %s138_s18  ;;  %p144_p5 = scmp.lt.s32.totalorder %s138_s18, %s138_s18 }
   0xc   :  { %p145_p6 = por %p144_p5, %p143_p4 }
   0xe   :  { %p146_p7 = pnand %p145_p6, %p139_p3 }
  0x10   :  { %149 = shalt.err (!%p146_p7)
}
  0x11   :  { %s201_s19 = smov 128   ;;  %s202_s20 = smov 8  }
  0x12   :  { %21 = dma.hbm_to_vmem [thread:$0]  %s275_s0, 256, %s16_s10, [#allocation3], %s201_s19, %s201_s19, %s202_s20  }
  0x13   :  { %s203_s23 = smov [#allocation5]   ;;  %s150_s27 = scalar_lea.hbm %s276_s1, 128 }
  0x14   :  { %s27_s24 = sshll.u32 %s203_s23, 4  ;;  %p151_p8 = scmp.ne.s32.totalorder %s276_s1, %s150_s27  ;;  %s28_s24 = int_to_ptr.vmem [resolvable:$true] %s27_s24 }
  0x15   :  { %p154_p9 = scmp.lt.u32.totalorder %s150_s27, %s276_s1 }
  0x17   :  { %p156_p10 = pnand %p154_p9, %p151_p8 }
  0x19   :  { %159 = shalt.err (!%p156_p10)
}
  0x1a   :  { %s160_s4 = scalar_lea.vmem %s28_s24, 128  ;;  %p165_p12 = scmp.lt.s32.totalorder %s28_s24, %s28_s24 }
  0x1b   :  { %p161_p11 = scmp.ne.s32.totalorder %s28_s24, %s160_s4  ;;  %p166_p13 = scmp.lt.s32.totalorder %s160_s4, %s160_s4 }
  0x1d   :  { %p167_p0 = por %p166_p13, %p165_p12 }
  0x1f   :  { %p168_p1 = pnand %p167_p0, %p161_p11 }
  0x21   :  { %171 = shalt.err (!%p168_p1)
}
  0x22   :  { %s204_s0 = smov 64   ;;  %s205_s5 = smov 4  }
  0x23   :  { %33 = dma.hbm_to_vmem [thread:$0]  %s276_s1, 128, %s28_s24, [#allocation6], %s204_s0, %s204_s0, %s205_s5  }
  0x24   :  { %194 = dma.done.wait [#allocation3], 256  }
  0x25   :  { %195 = vsyncadd [#allocation3], 4294967040 }
  0x26   :  { %196 = dma.done.wait [#allocation6], 128  }
  0x27   :  { %197 = vsyncadd [#allocation6], 4294967168  ;;  %v40_v0 = vld [vmem:[#allocation2] sm:$0xff]  ;;  %v41_v1 = vld [vmem:[#allocation2 + $0x8] sm:$0xff]  ;;  %v206_v32 = vmov 0.75   ;;  %s207_s1 = smov [#allocation7]  }
  0x28   :  { %v105_v2 = vld [vmem:[#allocation5] sm:$0xff]   ;;  %v48_v5 = vsub.f32 0.0, %v40_v0  ;;  %v49_v6 = vsub.f32 0.0, %v41_v1  ;;  %s94_s8 = sshll.u32 %s207_s1, 4  ;;  %s95_s8 = int_to_ptr.vmem [resolvable:$true] %s94_s8 }
  0x29   :  { %v106_v3 = vunpack.c.l.bf16 %v105_v2  ;;  %v107_v4 = vunpack.c.h.bf16 %v105_v2  ;;  %s172_s9 = scalar_lea.vmem %s95_s8, 128  ;;  %p177_p3 = scmp.lt.s32.totalorder %s95_s8, %s95_s8 }
  0x2a   :  { %p173_p2 = scmp.ne.s32.totalorder %s95_s8, %s172_s9  ;;  %p178_p4 = scmp.lt.s32.totalorder %s172_s9, %s172_s9 }
  0x2b   :  { %vm247_vm0 = vcmp.gt.f32.partialorder %v106_v3, 0.5  ;;  %vm251_vm1 = vcmp.gt.f32.partialorder %v107_v4, 0.5 }
  0x2c   :  { %v50_v9 = vsel %vm247_vm0, %v40_v0, %v48_v5  ;;  %v51_v10 = vsel %vm251_vm1, %v41_v1, %v49_v6  ;;  %v74_v33 = vsel %vm247_vm0, 0.25, %v206_v32  ;;  %v75_v35 = vsel %vm251_vm1, 0.25, %v206_v32  ;;  %p179_p5 = por %p178_p4, %p177_p3 }
  0x2d   :  { %v54_v11 = vand.u32 2147483647, %v50_v9  ;;  %v55_v12 = vand.u32 2147483647, %v51_v10  ;;  %v52_v21 = vmin.f32 %v50_v9, 0.0  ;;  %v53_v23 = vmin.f32 %v51_v10, 0.0 }
  0x2e   :  { %p180_p6 = pnand %p179_p5, %p173_p2 }
  0x2f   :  { %v56_v13 = vsub.f32 0.0, %v54_v11  ;;  %v57_v14 = vsub.f32 0.0, %v55_v12 }
  0x31   :  { %v58_v15 = vmul.f32 1.442695, %v56_v13  ;;  %v60_v16 = vmul.f32 1.442695, %v57_v14 }
  0x33   :  { %116 = vpow2.f32 %v58_v15 }
  0x34   :  { %118 = vpow2.f32 %v60_v16 }
  0x3d   :  { %v117_v17 = vpop.eup %116 }
  0x3e   :  { %v119_v18 = vpop.eup %118  ;;  %v62_v19 = vadd.f32 1.0, %v117_v17 }
  0x3f   :  { %v63_v20 = vadd.f32 1.0, %v119_v18 }
  0x40   :  { %120 = vlog2.f32 %v62_v19 }
  0x41   :  { %122 = vlog2.f32 %v63_v20 }
  0x4a   :  { %v121_v22 = vpop.eup %120 }
  0x4b   :  { %v123_v24 = vpop.eup %122  ;;  %v65_v25 = vmul.f32 0.6931472, %v121_v22 }
  0x4c   :  { %v67_v26 = vmul.f32 0.6931472, %v123_v24 }
  0x4d   :  { %v68_v27 = vsub.f32 %v52_v21, %v65_v25 }
  0x4e   :  { %v69_v28 = vsub.f32 %v53_v23, %v67_v26 }
  0x4f   :  { %v70_v29 = vmul.f32 1.442695, %v68_v27  ;;  %v76_v38 = vmul.f32 %v74_v33, %v68_v27 }
  0x50   :  { %v72_v30 = vmul.f32 1.442695, %v69_v28  ;;  %v77_v40 = vmul.f32 %v75_v35, %v69_v28 }
  0x51   :  { %124 = vpow2.f32 %v70_v29 }
  0x52   :  { %126 = vpow2.f32 %v72_v30 }
  0x5b   :  { %v125_v31 = vpop.eup %124 }
  0x5c   :  { %v127_v34 = vpop.eup %126  ;;  %v78_v36 = vsub.f32 1.0, %v125_v31 }
  0x5d   :  { %v79_v37 = vsub.f32 1.0, %v127_v34 }
  0x5e   :  { %v80_v39 = vmul.f32 %v78_v36, %v78_v36 }
  0x5f   :  { %v81_v41 = vmul.f32 %v79_v37, %v79_v37 }
  0x60   :  { %v82_v42 = vsub.f32 0.0, %v80_v39 }
  0x61   :  { %v83_v43 = vsub.f32 0.0, %v81_v41 }
  0x62   :  { %v84_v44 = vmul.f32 %v82_v42, %v76_v38 }
  0x63   :  { %v85_v45 = vmul.f32 %v83_v43, %v77_v40 }
  0x65   :  { %v86_v46 = vadd.f32 %v85_v45, %v84_v44 }
  0x67   :  { %87 = vst [vmem:[#allocation7] sm:$0xff] %v86_v46 }
  0x68   :  { %183 = shalt.err (!%p180_p6)
}
  0x69   :  { %s184_s12 = scalar_lea.hbm %s277_s2, 128 }
  0x6a   :  { %p185_p7 = scmp.ne.s32.totalorder %s277_s2, %s184_s12  ;;  %p188_p8 = scmp.lt.u32.totalorder %s184_s12, %s277_s2 }
  0x6c   :  { %p190_p9 = pnand %p188_p8, %p185_p7 }
  0x6e   :  { %193 = shalt.err (!%p190_p9)
}
  0x6f   :  { %97 = dma.vmem_to_hbm [thread:$0]  %s95_s8, 128, %s277_s2, [#allocation4]  }
  0x70   :  { %198 = dma.done.wait [#allocation4], 128  }
  0x71   :  { %199 = vsyncadd [#allocation4], 4294967168 }
  0x72   :  { %101 = vsyncpa [#allocation3], 1 }
  0x73   :  { %102 = vsyncpa [#allocation6], 1 }
  0x74   :  { %103 = vsyncpa [#allocation4], 1 }

</bundles_post_ra>
